<compile_context>
chip_gen: v5e
topology: v5e:2x2
jax: 0.10.0
libtpu: 0.0.40
codegen_flags: <defaults>
</compile_context>

<pallas_src>
import jax
import jax.numpy as jnp
from jax.experimental import pallas as pl
from jax.experimental.pallas import tpu as pltpu


_NUM_SPLITS = 2                           # leading "parallel" axis (v7x 2-TC split)
_TILE_BUDGET_BYTES = 8 * 1024 * 1024      # 2 inputs x 2 pipeline buffers of (tm, C)
_TM_CAP = 4096                            # upper bound on the row tile
_VMEM_LIMIT_BYTES = 32 * 1024 * 1024      # explicit scoped-VMEM limit (fits all gens)


def _round_up(x, m):
    return ((x + m - 1) // m) * m


def _soft_ce_kernel(yhat_ref, y_ref, acc_ref):
    i = pl.program_id(1)                                   # row-block index (reduction axis)

    logits = yhat_ref[...].astype(jnp.float32)             # (tm, C)
    targets = y_ref[...].astype(jnp.float32)               # (tm, C)

    # Numerically stable log-softmax pieces (row-wise, lane-axis reductions).
    m = jnp.max(logits, axis=-1, keepdims=True)            # (tm, 1)
    shifted = logits - m                                    # (tm, C)
    lse = jnp.log(jnp.sum(jnp.exp(shifted), axis=-1, keepdims=True))  # (tm, 1)

    # -y * log_softmax(y_hat) == y * (lse - shifted); saves materializing logp.
    nll = targets * (lse - shifted)                         # (tm, C)

    # Fold rows into an (8, C) sublane-aligned partial sum: pure VPU adds,
    # no cross-lane XLU reduce and no scalar/SMEM dependency per step.
    tm, c = nll.shape
    partial = jnp.sum(nll.reshape(tm // 8, 8, c), axis=0)   # (8, C)

    @pl.when(i == 0)
    def _():
        acc_ref[...] = jnp.zeros_like(acc_ref)

    acc_ref[...] += partial


def _choose_tiling(n_rows, n_classes, in_bytes_per_elem):
    """Pick (tm, blocks_per_split) so the double-buffered tiles fit VMEM and
    padding waste stays small."""
    tm_max = (_TILE_BUDGET_BYTES // (2 * n_classes * in_bytes_per_elem)) // 8 * 8
    tm_max = max(8, min(_TM_CAP, tm_max))
    rows_per_split = -(-n_rows // _NUM_SPLITS)              # ceil
    bps = max(1, -(-rows_per_split // tm_max))              # row-blocks per split
    tm = _round_up(-(-rows_per_split // bps), 8)            # <= tm_max (mult of 8)
    return tm, bps


def soft_cross_entropy_with_weights(y_hat, y, weights):
    """Pallas implementation of SoftCrossEntropyWithWeightsLoss.forward."""
    N, C = y_hat.shape
    assert y.shape == (N, C)

    in_bytes = jnp.dtype(y_hat.dtype).itemsize + jnp.dtype(y.dtype).itemsize
    tm, bps = _choose_tiling(N, C, in_bytes)
    n_padded = _NUM_SPLITS * bps * tm

    if n_padded != N:
        pad = n_padded - N
        # Padded rows have y == 0 -> they contribute exactly 0 to the loss.
        y_hat = jnp.pad(y_hat, ((0, pad), (0, 0)))
        y = jnp.pad(y, ((0, pad), (0, 0)))

    # TODO(synk): for very large C (e.g. vocab-sized logits) add a C grid axis
    # with a streaming/two-pass logsumexp instead of one (tm, C) block per row.

    cost = pl.CostEstimate(
        flops=6 * n_padded * C,
        transcendentals=n_padded * C,
        bytes_accessed=n_padded * C * in_bytes + _NUM_SPLITS * 8 * C * 4,
    )

    partial = pl.pallas_call(
        _soft_ce_kernel,
        out_shape=jax.ShapeDtypeStruct((_NUM_SPLITS * 8, C), jnp.float32),
        grid=(_NUM_SPLITS, bps),
        in_specs=[
            pl.BlockSpec((tm, C), lambda s, i: (s * bps + i, 0)),   # y_hat tile
            pl.BlockSpec((tm, C), lambda s, i: (s * bps + i, 0)),   # y tile
        ],
        out_specs=pl.BlockSpec((8, C), lambda s, i: (s, 0)),        # per-split accumulator
        compiler_params=pltpu.CompilerParams(
            dimension_semantics=("parallel", "arbitrary"),
            vmem_limit_bytes=_VMEM_LIMIT_BYTES,
        ),
        cost_estimate=cost,
    )(y_hat, y)

    # Single cross-lane reduce + normalization outside the kernel.
    wsum = jnp.sum(weights.astype(jnp.float32))
    return jnp.sum(partial) / (wsum * jnp.float32(C))


def _reference(y_hat, y, weights):
    logp = jax.nn.log_softmax(y_hat.astype(jnp.float32), axis=-1)
    weighted_sum = jnp.sum(-y.astype(jnp.float32) * logp, axis=0) / jnp.sum(
        weights.astype(jnp.float32))
    return jnp.mean(weighted_sum)


if __name__ == "__main__":
    key = jax.random.PRNGKey(0)
    k1, k2, k3, k4 = jax.random.split(key, 4)

    # Small, lane-aligned case.
    N, C = 16, 128
    y_hat = jax.random.normal(k1, (N, C), dtype=jnp.float32)
    y = jax.nn.softmax(jax.random.normal(k2, (N, C), dtype=jnp.float32), axis=-1)
    weights = jnp.linspace(0.5, 1.5, C, dtype=jnp.float32)

    loss = jax.block_until_ready(soft_cross_entropy_with_weights(y_hat, y, weights))
    ref = _reference(y_hat, y, weights)
    assert jnp.allclose(loss, ref, rtol=1e-5, atol=1e-5), (loss, ref)

    # Ragged batch size exercises the zero-padding path.
    N2 = 13
    y_hat2 = jax.random.normal(k3, (N2, C), dtype=jnp.float32)
    y2 = jax.nn.softmax(jax.random.normal(k4, (N2, C), dtype=jnp.float32), axis=-1)
    loss2 = jax.block_until_ready(soft_cross_entropy_with_weights(y_hat2, y2, weights))
    ref2 = _reference(y_hat2, y2, weights)
    assert jnp.allclose(loss2, ref2, rtol=1e-5, atol=1e-5), (loss2, ref2)

    print("KERNEL_OK")
</pallas_src>

<mosaic_0001>
module attributes {stable_mosaic.version = 11 : i64} {
  func.func @_soft_ce_kernel(%arg0: i32, %arg1: i32, %arg2: memref<8x128xf32, #tpu.memory_space<vmem>>, %arg3: memref<8x128xf32, #tpu.memory_space<vmem>>, %arg4: memref<8x128xf32, #tpu.memory_space<vmem>>) attributes {dimension_semantics = [#tpu.dimension_semantics<parallel>, #tpu.dimension_semantics<arbitrary>], iteration_bounds = array<i64: 2, 1>, scalar_prefetch = 0 : i64, scratch_operands = 0 : i64, tpu.core_type = #tpu.core_type<tc>, window_params = [{transform_indices = @transform_0, window_bounds = array<i64: 8, 128>}, {transform_indices = @transform_1, window_bounds = array<i64: 8, 128>}, {transform_indices = @transform_2, window_bounds = array<i64: 8, 128>}]} {
    %c0 = arith.constant 0 : index
    %c0_0 = arith.constant 0 : index
    %0 = vector.load %arg2[%c0, %c0_0] : memref<8x128xf32, #tpu.memory_space<vmem>>, vector<8x128xf32>
    %c0_1 = arith.constant 0 : index
    %c0_2 = arith.constant 0 : index
    %1 = vector.load %arg3[%c0_1, %c0_2] : memref<8x128xf32, #tpu.memory_space<vmem>>, vector<8x128xf32>
    %cst = arith.constant dense<0xFF800000> : vector<8xf32>
    %2 = vector.multi_reduction <maximumf>, %0, %cst [1] : vector<8x128xf32> to vector<8xf32>
    %3 = vector.shape_cast %2 : vector<8xf32> to vector<8x1xf32>
    %4 = vector.broadcast %3 : vector<8x1xf32> to vector<8x128xf32>
    %5 = arith.subf %0, %4 : vector<8x128xf32>
    %6 = math.exp %5 : vector<8x128xf32>
    %cst_3 = arith.constant dense<0.000000e+00> : vector<8xf32>
    %7 = vector.multi_reduction <add>, %6, %cst_3 [1] : vector<8x128xf32> to vector<8xf32>
    %8 = vector.shape_cast %7 : vector<8xf32> to vector<8x1xf32>
    %9 = math.log %8 : vector<8x1xf32>
    %10 = vector.broadcast %9 : vector<8x1xf32> to vector<8x128xf32>
    %11 = arith.subf %10, %5 : vector<8x128xf32>
    %12 = arith.mulf %1, %11 : vector<8x128xf32>
    %13 = vector.shape_cast %12 : vector<8x128xf32> to vector<1x8x128xf32>
    %cst_4 = arith.constant dense<0.000000e+00> : vector<8x128xf32>
    %14 = vector.multi_reduction <add>, %13, %cst_4 [0] : vector<1x8x128xf32> to vector<8x128xf32>
    %c0_i32 = arith.constant 0 : i32
    %15 = arith.cmpi eq, %arg1, %c0_i32 : i32
    %16 = arith.extui %15 : i1 to i32
    %c0_i32_5 = arith.constant 0 : i32
    %17 = arith.cmpi ne, %16, %c0_i32_5 : i32
    scf.if %17 {
      %cst_10 = arith.constant 0.000000e+00 : f32
      %21 = vector.broadcast %cst_10 : f32 to vector<8x128xf32>
      %c0_11 = arith.constant 0 : index
      %c0_12 = arith.constant 0 : index
      %22 = vector.load %arg4[%c0_11, %c0_12] : memref<8x128xf32, #tpu.memory_space<vmem>>, vector<8x128xf32>
      tpu.vector_store %arg4[%c0_11, %c0_12], %21 {strides = array<i32>} : memref<8x128xf32, #tpu.memory_space<vmem>>, vector<8x128xf32>,
    } else {
    }
    %c0_6 = arith.constant 0 : index
    %c0_7 = arith.constant 0 : index
    %18 = vector.load %arg4[%c0_6, %c0_7] : memref<8x128xf32, #tpu.memory_space<vmem>>, vector<8x128xf32>
    %19 = arith.addf %18, %14 : vector<8x128xf32>
    %c0_8 = arith.constant 0 : index
    %c0_9 = arith.constant 0 : index
    %20 = vector.load %arg4[%c0_8, %c0_9] : memref<8x128xf32, #tpu.memory_space<vmem>>, vector<8x128xf32>
    tpu.vector_store %arg4[%c0_8, %c0_9], %19 {strides = array<i32>} : memref<8x128xf32, #tpu.memory_space<vmem>>, vector<8x128xf32>,
    return
  }
  func.func @transform_0(%arg0: i32, %arg1: i32) -> (i32, i32) {
    %c1_i32 = arith.constant 1 : i32
    %0 = arith.muli %arg0, %c1_i32 : i32
    %1 = arith.addi %0, %arg1 : i32
    %c0_i32 = arith.constant 0 : i32
    %c0_i32_0 = arith.constant 0 : i32
    return %1, %c0_i32 : i32, i32
  }
  func.func @transform_1(%arg0: i32, %arg1: i32) -> (i32, i32) {
    %c1_i32 = arith.constant 1 : i32
    %0 = arith.muli %arg0, %c1_i32 : i32
    %1 = arith.addi %0, %arg1 : i32
    %c0_i32 = arith.constant 0 : i32
    %c0_i32_0 = arith.constant 0 : i32
    return %1, %c0_i32 : i32, i32
  }
  func.func @transform_2(%arg0: i32, %arg1: i32) -> (i32, i32) {
    %c0_i32 = arith.constant 0 : i32
    %c0_i32_0 = arith.constant 0 : i32
    return %arg0, %c0_i32 : i32, i32
  }
}

</mosaic_0001>

<bundles_post_ra>
// kernel: tpu_custom_call.1
= control target key start
LH: loop header
LB: loop body
LE: loop exit
PB: predicated region body
PF: predicated region fallthrough
CT: control target
= control target key end

     0   :  { %7 = vsyncpa [#allocation3], 0  ;;  %s745_s0 = inlined_call_operand.hbm [shape: f32[16,128], index: 0, kind: input, shape index: {}]   ;;  %s746_s1 = inlined_call_operand.hbm [shape: f32[16,128], index: 1, kind: input, shape index: {}]   ;;  %s747_s2 = inlined_call_operand.hbm [shape: f32[16,128], index: 2, kind: output, shape index: {}]  }
   0x1   :  { %9 = vsyncpa [#allocation3 + $0x1], 0 }
   0x2   :  { %10 = vsyncpa [#allocation6], 0 }
   0x3   :  { %12 = vsyncpa [#allocation6 + $0x1], 0 }
   0x4   :  { %13 = vsyncpa [#allocation4], 0 }
   0x5   :  { %15 = vsyncpa [#allocation4 + $0x1], 0  ;;  %s612_s9 = smov 0   ;;  %s614_s10 = smov 0  }
   0x6   :  { %s616_s11 = smov 0   ;;  %s618_s12 = smov 0  }
   0x7   :  { %s620_s13 = smov 0   ;;  %s622_s14 = smov 0  }
   0x8 LB: > { %s361_s15 = sadd.s32 4294967295, %s595_s14   ;;  %s362_s16 = sadd.s32 4294967294, %s595_s14   ;;  %s595_s14 = sphi %s622_s14, %s21_s14   ;;  %s591_s13 = sphi %s620_s13, %s756_s13   ;;  %s587_s12 = sphi %s618_s12, %s755_s12   ;;  %s583_s11 = sphi %s616_s11, %s754_s11   ;;  %s579_s10 = sphi %s614_s10, %s753_s10   ;;  %s575_s9 = sphi %s612_s9, %s752_s9  }
   0x9   : > { %s33_s17 = sadd.s32 1, %s591_s13  ;;  %s42_s18 = sadd.s32 1, %s583_s11 }
   0xa   : > { %p35_p0 = scmp.ge.s32.totalorder %s33_s17, 2  ;;  %p49_p1 = scmp.ne.s32.totalorder %s583_s11, %s579_s10 }
   0xb   : > { %p50_p2 = scmp.eq.s32.totalorder %s595_s14, 0  ;;  %p55_p3 = scmp.ne.s32.totalorder %s579_s10, %s575_s9 }
   0xc   : > { %s758_s17 = smov (%p35_p0, %s33_s17), 0  ;;  %p56_p5 = scmp.eq.s32.totalorder %s361_s15, 0 }
   0xd   : > { %p653_p4 = por %p50_p2, %p49_p1  ;;  %s39_s20 = ssub.s32 %s591_s13, %s758_s17 }
   0xe   : > { %p107_p6 = scmp.eq.s32.totalorder %s361_s15, 1  ;;  %p40_p7 = scmp.eq.s32.totalorder %s39_s20, 0 }
   0xf   : > { %p659_p8 = por %p56_p5, %p55_p3  ;;  %p113_p10 = scmp.eq.s32.totalorder %s362_s16, 1 }
  0x10   : > { %p663_p9 = por %p107_p6, %p49_p1  ;;  %p364_p12 = scmp.ge.s32.totalorder %s595_s14, 2 }
  0x11   : > { %s668_s23 = scalar_select %p40_p7, %s583_s11, %s42_s18  }
  0x12   : > { %p670_p11 = por %p113_p10, %p55_p3  ;;  %p394_p13 = scmp.lt.s32.totalorder %s595_s14, 2 }
  0x13   : > { %s133_s25 = sand.u32 1, %s583_s11   ;;  %s366_s27 = sshll.u32 %s591_s13, 3 }
  0x14   : > { %s365_s26 = sshll.u32 %s133_s25, 3  ;;  %s142_s30 = scalar_lea.hbm %s745_s0, %s366_s27 }
  0x15   : > { %s137_s3 = scalar_lea.vmem [#allocation2], %s365_s26  ;;  %s144_s5 = sshll.u32 %s142_s30, 4  ;;  %s145_s5 = int_to_ptr.hbm [resolvable:$true] %s144_s5 }
  0x16   : > { %s146_s4 = sshll.u32 %s137_s3, 4  ;;  %p384_p0 = pnand %p394_p13, %p653_p4  ;;  %s147_s4 = int_to_ptr.vmem [resolvable:$true] %s146_s4 }
  0x17   : > { %p369_p1 = scmp.ge.s32.totalorder %s595_s14, 1  ;;  %p171_p2 = scmp.lt.s32.totalorder %s595_s14, 3 }
  0x18   : > { %s134_s6 = scalar_lea.sflag [#allocation3], %s133_s25  ;;  %s162_s15 = scalar_lea.hbm %s746_s1, %s366_s27 }
  0x19   : > { %386 = dma.hbm_to_vmem [thread:$0]  (!%p384_p0), %s145_s5, 128, %s147_s4, %s134_s6  }
  0x1a   : > { %p172_p3 = pnand %p369_p1, %p171_p2  ;;  %s157_s16 = scalar_lea.vmem [#allocation5], %s365_s26 }
  0x1b   : > { %s166_s18 = sshll.u32 %s157_s16, 4  ;;  %s164_s20 = sshll.u32 %s162_s15, 4  ;;  %s167_s18 = int_to_ptr.vmem [resolvable:$true] %s166_s18  ;;  %s165_s20 = int_to_ptr.hbm [resolvable:$true] %s164_s20 }
  0x1c   : > { %s154_s28 = scalar_lea.sflag [#allocation6], %s133_s25  ;;  %175 = sbr.rel (%p172_p3) target bundleno = 296 (0x128), region = 28 }
  0x1d   : > { %389 = dma.hbm_to_vmem [thread:$0]  (!%p384_p0), %s165_s20, 128, %s167_s18, %s154_s28  }
  0x1e   : > { %s689_s19 = sand.u32 (!%p172_p3), 1, %s579_s10  }
  0x1f   : > { %s692_s29 = sshll.u32 (!%p172_p3), %s689_s19, 3  ;;  %s178_s30 = scalar_lea.sflag (!%p172_p3), [#allocation3], %s689_s19 }
  0x20   : > { %s181_s3 = scalar_lea.vmem (!%p172_p3), [#allocation2], %s692_s29 }
  0x21   : > { %562 = dma.done.wait (%p659_p8), %s178_s30, 128  }
  0x22   : > { %564 = vsyncadd (%p659_p8), %s178_s30, 4294967168  ;;  %s188_s25 = scalar_lea.sflag [#allocation6], %s689_s19  ;;  %s191_s26 = scalar_lea.vmem [#allocation5], %s692_s29 }
  0x23   : > { %566 = dma.done.wait (%p659_p8), %s188_s25, 128  }
  0x24   : > { %568 = vsyncadd (%p659_p8), %s188_s25, 4294967168  ;;  %v220_v0 = vld [vmem:[%s181_s3] sm:$0xff]  ;;  %s374_s27 = sshll.u32 %s587_s12, 3  ;;  %v221_v8 = vld [vmem:[%s191_s26] sm:$0xff]  ;;  %s217_s6 = scalar_lea.vmem [#allocation7], %s692_s29 }
  0x25   : > { %222 = vmax.xlane.f32.xlu0 %v220_v0  ;;  %s253_s21 = scalar_lea.hbm %s747_s2, %s374_s27  ;;  %s255_s7 = sshll.u32 %s217_s6, 4  ;;  %s256_s7 = int_to_ptr.vmem [resolvable:$true] %s255_s7 }
  0x26   : > { %s257_s8 = sshll.u32 %s253_s21, 4  ;;  %s243_s15 = scalar_lea.sflag [#allocation4], %s689_s19  ;;  %s258_s8 = int_to_ptr.hbm [resolvable:$true] %s257_s8 }
  0x27   : > { %s523_s16 = sshra.s32 %s258_s8, 4  ;;  %s529_s28 = scalar_lea.hbm %s747_s2, 16  ;;  %s524_s16 = int_to_ptr.hbm [resolvable:$true] %s523_s16 }
  0x28   : > { %s525_s12 = scalar_lea.hbm %s524_s16, 8  ;;  %p530_p7 = scmp.lt.s32.totalorder %s524_s16, %s747_s2 }
  0x29   : > { %p526_p4 = scmp.ne.s32.totalorder %s524_s16, %s525_s12  ;;  %p531_p8 = scmp.lt.s32.totalorder %s529_s28, %s525_s12 }
  0x2b   : > { %p527_p5 = pnand %p526_p4, %p663_p9  ;;  %p532_p10 = por %p531_p8, %p530_p7 }
  0x2d   : > { %p528_p6 = pneg %p527_p5 }
  0x2f   : > { %p533_p13 = pnand %p532_p10, %p528_p6 }
  0x98   : > { %v223_v1 = vpop.xlane.xlu0 %222 }
  0x99   : > { %v224_v2 = vsub.f32 %v220_v0, %v223_v1 }
  0x9b   : > { %v225_v3 = vmul.f32 1.442695, %v224_v2 }
  0x9d   : > { %445 = vpow2.f32 %v225_v3 }
  0xa3   : > { %v446_v4 = vpop.eup %445 }
  0xa4   : > { %227 = vadd.xlane.f32.xlu0 %v446_v4 }
 0x117   : > { %v228_v5 = vpop.xlane.xlu0 %227 }
 0x118   : > { %447 = vlog2.f32 %v228_v5 }
 0x11e   : > { %v448_v6 = vpop.eup %447 }
 0x11f   : > { %v230_v7 = vmul.f32 0.6931472, %v448_v6 }
 0x121   : > { %v231_v9 = vsub.f32 %v230_v7, %v224_v2 }
 0x123   : > { %v232_v10 = vmul.f32 %v231_v9, %v221_v8 }
 0x125   : > { %241 = vst [vmem:[%s217_s6] sm:$0xff] %v232_v10 }
 0x126   : > { %536 = shalt.err (!%p533_p13)
}
 0x127   : > { %381 = dma.vmem_to_hbm [thread:$0]  (%p663_p9), %s256_s7, 128, %s258_s8, %s243_s15  }
 0x128 PF: > { %s269_s19 = sand.u32 1, %s575_s9   ;;  %p391_p0 = pnand %p364_p12, %p670_p11 }
 0x129   : > { %s270_s3 = scalar_lea.sflag [#allocation4], %s269_s19 }
 0x12a   : > { %p392_p1 = pneg %p391_p0 }
 0x12c   : > { %570 = dma.done.wait (%p392_p1), %s270_s3, 128  }
 0x12d   : > { %572 = vsyncadd (%p392_p1), %s270_s3, 4294967168  ;;  %s21_s14 = sadd.s32 1, %s595_s14   ;;  %s752_s9 = smov %s579_s10 }
 0x12e   : > { %p18_p2 = scmp.ge.s32.totalorder %s21_s14, 4   ;;  %s753_s10 = smov %s583_s11 }
 0x12f   : > { %s754_s11 = smov %s668_s23  ;;  %s755_s12 = smov %s591_s13 }
 0x130   : > { %s756_s13 = smov %s758_s17  ;;  %20 = sbr.rel (!%p18_p2) target bundleno = 8 (0x8), region = 90 }
 0x135   :  { %276 = vsyncpa [#allocation3], 1 }
 0x136   :  { %278 = vsyncpa [#allocation3 + $0x1], 1 }
 0x137   :  { %279 = vsyncpa [#allocation6], 1 }
 0x138   :  { %281 = vsyncpa [#allocation6 + $0x1], 1 }
 0x139   :  { %282 = vsyncpa [#allocation4], 1 }
 0x13a   :  { %284 = vsyncpa [#allocation4 + $0x1], 1 }

</bundles_post_ra>
